<compile_context>
chip_gen: v5e
topology: v5e:2x2
jax: 0.10.0
libtpu: 0.0.40
codegen_flags: <defaults>
</compile_context>

<pallas_src>
import functools

import jax
import jax.numpy as jnp
import numpy as np
from jax.experimental import pallas as pl
from jax.experimental.pallas import tpu as pltpu


# ----------------------------- weight pre-packing --------------------------------
def _conv_out(n, k, s):
    p = k // 2
    return (n + 2 * p - k) // s + 1


def _make_wcat_taps(w, win, wo, stride, pad):
    """Per-tap structured weight blocks (k, ci*win, co*wo).

    Folds kw taps + column stride + zero column padding into dense matrices:
      taps[kh, ci*win + iw, co*wo + ow] = w[kh, iw - stride*ow + pad, ci, co]
    when that kw index lies in [0, k), else 0.  Activation lane layout is
    lane = ci*win + iw (channel-major, per image).
    """
    wnp = np.asarray(w, np.float32)
    k, _, ci, co = wnp.shape
    iw = np.arange(win)[:, None]
    ow = np.arange(wo)[None, :]
    kw = iw - stride * ow + pad                              # (win, wo)
    valid = (kw >= 0) & (kw < k)
    kw_c = np.clip(kw, 0, k - 1)
    wk = wnp[:, kw_c, :, :]                                  # (k, win, wo, ci, co)
    wk = np.where(valid[None, :, :, None, None], wk, 0.0)
    wk = np.transpose(wk, (0, 3, 1, 4, 2))                   # (k, ci, win, co, wo)
    return wk.reshape(k, ci * win, co * wo)


def _block_diag_batch(taps, b_tile):
    """Block-diagonal batch packing: (k, lin, lout) -> (k*b_tile*lin, b_tile*lout)."""
    k, lin, lout = taps.shape
    out = np.zeros((k, b_tile * lin, b_tile * lout), np.float32)
    for b in range(b_tile):
        out[:, b * lin:(b + 1) * lin, b * lout:(b + 1) * lout] = taps
    return out.reshape(k * b_tile * lin, b_tile * lout)


def prepare_ds4_down(params, *, H, W, kernel_size, b_tile=2):
    """Pack DS4_DOWN weights into matmul-ready structured matrices (do once)."""
    w11, b11, w12, w21, b21, w22 = params
    k1, k2 = kernel_size, 3
    p1, p2 = k1 // 2, k2 // 2
    Ho1, Wo1 = _conv_out(H, k1, 2), _conv_out(W, k1, 2)
    Ho2, Wo2 = _conv_out(Ho1, k1, 2), _conv_out(Wo1, k1, 2)

    def wcat(w, win, wo, stride, pad):
        return jnp.asarray(_block_diag_batch(_make_wcat_taps(w, win, wo, stride, pad),
                                             b_tile))

    def bias(b, wo):
        v = np.tile(np.repeat(np.asarray(b, np.float32), wo), b_tile)
        return jnp.asarray(v[None, :])                       # (1, b_tile*co*wo)

    packed = (
        wcat(w11, W, Wo1, 2, p1),      # conv1a (stride 2, bias)
        bias(b11, Wo1),
        wcat(w12, Wo1, Wo1, 1, p2),    # conv1b (stride 1, no bias)
        wcat(w21, Wo1, Wo2, 2, p1),    # conv2a (stride 2, bias)
        bias(b21, Wo2),
        wcat(w22, Wo2, Wo2, 1, p2),    # conv2b (stride 1, no bias)
    )
    dims = dict(H=H, W=W, Cin=w11.shape[2], Ho1=Ho1, Wo1=Wo1, Ho2=Ho2, Wo2=Wo2,
                c4=w22.shape[3], k1=k1, b_tile=b_tile)
    return packed, dims


# ----------------------------------- kernel --------------------------------------
def _ds4_down_kernel(x_ref, w1c, b1r, w2c, w3c, b2r, w4c, out_ref,
                     pad1, pad2, pad3, pad4, *, negval, k1, k2, Ho1, Ho2):
    neg = jnp.float32(negval)

    def lrelu(a):
        return jnp.where(a >= 0, a, neg * a)

    def conv(x_rows, pad_ref, wcat_ref, k, stride, hout):
        """One conv as k dense tap matmuls.

        Row taps (and virtual zero row padding) come from (strided) sublane
        slices of a zero-padded VMEM row scratch — pure data movement, off the
        MXU.  Column taps, column stride and column padding are folded into
        the pre-packed structured weight matrix wcat (k*lin, lout).
        """
        hin, lin = x_rows.shape
        p = k // 2
        if p > 0:
            zrow = jnp.zeros((p, lin), jnp.float32)
            pad_ref[0:p, :] = zrow
            pad_ref[p + hin:p + hin + p, :] = zrow
        pad_ref[p:p + hin, :] = x_rows

        out = None
        for t in range(k):
            if stride == 1:
                lhs = pad_ref[t:t + hout, :]
            else:
                lhs = pad_ref[pl.ds(t, hout, stride=stride), :]
            part = jnp.dot(lhs, wcat_ref[t * lin:(t + 1) * lin, :],
                           preferred_element_type=jnp.float32)
            out = part if out is None else out + part
        # TODO(synk): on v7x, a single dot_general over (tap, lin) would let the
        # MRB accumulate the k tap products in place.
        return out

    xrows = x_ref[...].astype(jnp.float32)                       # (H, BT*Cin*W)

    a1 = lrelu(conv(xrows, pad1, w1c, k1, 2, Ho1) + b1r[...])    # (Ho1, BT*c1*Wo1)
    y1 = conv(a1, pad2, w2c, k2, 1, Ho1)                         # (Ho1, BT*c2*Wo1)
    a2 = lrelu(conv(y1, pad3, w3c, k1, 2, Ho2) + b2r[...])       # (Ho2, BT*c3*Wo2)
    y2 = conv(a2, pad4, w4c, k2, 1, Ho2)                         # (Ho2, BT*c4*Wo2)

    out_ref[...] = y2.astype(out_ref.dtype)                      # lane-dense store


# ---------------------------------- wrapper ---------------------------------------
def ds4_down_forward(x_nchw, packed, *, dims, negval):
    """Full DS4_DOWN forward.  Input/output NCHW to match the PyTorch module."""
    B, C, H, W = x_nchw.shape
    bt = dims["b_tile"]
    # Packing is specialized to (H, W, Cin, b_tile): catch silent mismatches.
    assert (H, W, C) == (dims["H"], dims["W"], dims["Cin"]), "re-run prepare_ds4_down"
    assert B % bt == 0, "batch must be a multiple of the batch lane tile"
    G = B // bt
    Ho1, Ho2, Wo2, c4 = dims["Ho1"], dims["Ho2"], dims["Wo2"], dims["c4"]
    k1, k2 = dims["k1"], 3

    w1c, b1r, w2c, w3c, b2r, w4c = packed
    LIN1 = bt * C * W
    LOUT4 = w4c.shape[1]                                         # bt * c4 * Wo2

    # NCHW -> batch-lane-packed rows layout (G, H, bt*C*W); lane = b*C*W + c*W + iw.
    # TODO(synk): accept this rows layout at the module boundary to drop the
    # wrapper transposes entirely.
    x_rows = (x_nchw.reshape(G, bt, C, H, W)
              .transpose(0, 3, 1, 2, 4)
              .reshape(G, H, LIN1))

    kern = functools.partial(_ds4_down_kernel, negval=negval,
                             k1=k1, k2=k2, Ho1=Ho1, Ho2=Ho2)
    wargs = (w1c, b1r, w2c, w3c, b2r, w4c)
    wspecs = [pl.BlockSpec(a.shape, lambda g: (0, 0)) for a in wargs]

    scratch = [
        pltpu.VMEM((H + 2 * (k1 // 2), LIN1), jnp.float32),                # conv1a rows
        pltpu.VMEM((Ho1 + 2 * (k2 // 2), w2c.shape[0] // k2), jnp.float32),  # conv1b rows
        pltpu.VMEM((Ho1 + 2 * (k1 // 2), w3c.shape[0] // k1), jnp.float32),  # conv2a rows
        pltpu.VMEM((Ho2 + 2 * (k2 // 2), w4c.shape[0] // k2), jnp.float32),  # conv2b rows
    ]

    out = pl.pallas_call(
        kern,
        out_shape=jax.ShapeDtypeStruct((G, Ho2, LOUT4), x_nchw.dtype),
        grid_spec=pltpu.PrefetchScalarGridSpec(
            num_scalar_prefetch=0,
            grid=(G,),
            in_specs=[pl.BlockSpec((pl.Squeezed(), H, LIN1), lambda g: (g, 0, 0))]
                     + wspecs,
            out_specs=pl.BlockSpec((pl.Squeezed(), Ho2, LOUT4), lambda g: (g, 0, 0)),
            scratch_shapes=scratch,
        ),
        compiler_params=pltpu.CompilerParams(
            dimension_semantics=("parallel",)),
    )(x_rows, *wargs)

    # (G, Ho2, bt*c4*Wo2) -> (B, c4, Ho2, Wo2)
    out = out.reshape(G, Ho2, bt, c4, Wo2).transpose(0, 2, 3, 1, 4)
    return out.reshape(B, c4, Ho2, Wo2)


# ------------------------------ reference (plain JAX) ------------------------------
def _ref_forward(x_nchw, params, *, negval, kernel_size):
    w11, b11, w12, w21, b21, w22 = params
    pad = kernel_size // 2

    def conv(x, w, stride, padv, b=None):
        y = jax.lax.conv_general_dilated(
            x, w, (stride, stride), [(padv, padv), (padv, padv)],
            dimension_numbers=("NHWC", "HWIO", "NHWC"))
        if b is not None:
            y = y + b
        return y

    x = jnp.transpose(x_nchw, (0, 2, 3, 1))
    y = conv(x, w11, 2, pad, b11)
    y = jnp.where(y >= 0, y, negval * y)
    y = conv(y, w12, 1, 1)
    z = conv(y, w21, 2, pad, b21)
    z = jnp.where(z >= 0, z, negval * z)
    z = conv(z, w22, 1, 1)
    return jnp.transpose(z, (0, 3, 1, 2))


if __name__ == "__main__":
    n_feat, kernel_size, negval = 4, 3, 0.2
    # B=4 -> batch lane tile of 2 (128-lane operands) AND grid=(2,) "parallel"
    # steps so both v7x TensorCores get work.
    B, H, W = 4, 16, 16

    key = jax.random.PRNGKey(0)
    ks = jax.random.split(key, 7)
    # HWIO weights (deterministic synthetic init).
    w11 = 0.1 * jax.random.normal(ks[0], (kernel_size, kernel_size, n_feat, n_feat), jnp.float32)
    b11 = 0.1 * jax.random.normal(ks[1], (n_feat,), jnp.float32)
    w12 = 0.1 * jax.random.normal(ks[2], (3, 3, n_feat, 2 * n_feat), jnp.float32)
    w21 = 0.1 * jax.random.normal(ks[3], (kernel_size, kernel_size, 2 * n_feat, 4 * n_feat), jnp.float32)
    b21 = 0.1 * jax.random.normal(ks[4], (4 * n_feat,), jnp.float32)
    w22 = 0.1 * jax.random.normal(ks[5], (3, 3, 4 * n_feat, 4 * n_feat), jnp.float32)
    params = (w11, b11, w12, w21, b21, w22)

    x = jax.random.normal(ks[6], (B, n_feat, H, W), jnp.float32)

    # One-time weight packing (weights are static in a real deployment).
    b_tile = 2 if B % 2 == 0 else 1
    packed, dims = prepare_ds4_down(params, H=H, W=W, kernel_size=kernel_size,
                                    b_tile=b_tile)

    fwd = jax.jit(functools.partial(ds4_down_forward, dims=dims, negval=negval))
    out = jax.block_until_ready(fwd(x, packed))

    ref = _ref_forward(x, params, negval=negval, kernel_size=kernel_size)
    assert out.shape == (B, 4 * n_feat, H // 4, W // 4), out.shape
    assert np.allclose(np.asarray(out), np.asarray(ref), rtol=1e-4, atol=1e-4)

    print("KERNEL_OK")
</pallas_src>

<mosaic_0001>
module attributes {stable_mosaic.version = 11 : i64} {
  func.func @_ds4_down_kernel(%arg0: i32, %arg1: memref<1x16x128xf32, #tpu.memory_space<vmem>>, %arg2: memref<384x64xf32, #tpu.memory_space<vmem>>, %arg3: memref<1x64xf32, #tpu.memory_space<vmem>>, %arg4: memref<192x128xf32, #tpu.memory_space<vmem>>, %arg5: memref<384x128xf32, #tpu.memory_space<vmem>>, %arg6: memref<1x128xf32, #tpu.memory_space<vmem>>, %arg7: memref<384x128xf32, #tpu.memory_space<vmem>>, %arg8: memref<1x4x128xf32, #tpu.memory_space<vmem>>, %arg9: memref<18x128xf32, #tpu.memory_space<vmem>>, %arg10: memref<10x64xf32, #tpu.memory_space<vmem>>, %arg11: memref<10x128xf32, #tpu.memory_space<vmem>>, %arg12: memref<6x128xf32, #tpu.memory_space<vmem>>) attributes {dimension_semantics = [#tpu.dimension_semantics<parallel>], iteration_bounds = array<i64: 2>, scalar_prefetch = 0 : i64, scratch_operands = 4 : i64, tpu.core_type = #tpu.core_type<tc>, window_params = [{transform_indices = @transform_0, window_bounds = array<i64: 1, 16, 128>}, {pipeline_mode = #tpu.pipeline_mode<synchronous>, transform_indices = @transform_1, window_bounds = array<i64: 384, 64>}, {pipeline_mode = #tpu.pipeline_mode<synchronous>, transform_indices = @transform_2, window_bounds = array<i64: 1, 64>}, {pipeline_mode = #tpu.pipeline_mode<synchronous>, transform_indices = @transform_3, window_bounds = array<i64: 192, 128>}, {pipeline_mode = #tpu.pipeline_mode<synchronous>, transform_indices = @transform_4, window_bounds = array<i64: 384, 128>}, {pipeline_mode = #tpu.pipeline_mode<synchronous>, transform_indices = @transform_5, window_bounds = array<i64: 1, 128>}, {pipeline_mode = #tpu.pipeline_mode<synchronous>, transform_indices = @transform_6, window_bounds = array<i64: 384, 128>}, {transform_indices = @transform_7, window_bounds = array<i64: 1, 4, 128>}]} {
    %c0 = arith.constant 0 : index
    %c0_0 = arith.constant 0 : index
    %c0_1 = arith.constant 0 : index
    %0 = vector.load %arg1[%c0, %c0_0, %c0_1] : memref<1x16x128xf32, #tpu.memory_space<vmem>>, vector<1x16x128xf32>
    %1 = vector.shape_cast %0 : vector<1x16x128xf32> to vector<16x128xf32>
    %cst = arith.constant 0.000000e+00 : f32
    %2 = vector.broadcast %cst : f32 to vector<1x128xf32>
    %c0_2 = arith.constant 0 : index
    %c0_3 = arith.constant 0 : index
    %3 = vector.load %arg9[%c0_2, %c0_3] : memref<18x128xf32, #tpu.memory_space<vmem>>, vector<1x128xf32>
    tpu.vector_store %arg9[%c0_2, %c0_3], %2 {strides = array<i32>} : memref<18x128xf32, #tpu.memory_space<vmem>>, vector<1x128xf32>,
    %c17 = arith.constant 17 : index
    %c0_4 = arith.constant 0 : index
    %4 = vector.load %arg9[%c17, %c0_4] : memref<18x128xf32, #tpu.memory_space<vmem>>, vector<1x128xf32>
    tpu.vector_store %arg9[%c17, %c0_4], %2 {strides = array<i32>} : memref<18x128xf32, #tpu.memory_space<vmem>>, vector<1x128xf32>,
    %c1 = arith.constant 1 : index
    %c0_5 = arith.constant 0 : index
    %5 = vector.load %arg9[%c1, %c0_5] : memref<18x128xf32, #tpu.memory_space<vmem>>, vector<16x128xf32>
    tpu.vector_store %arg9[%c1, %c0_5], %1 {strides = array<i32>} : memref<18x128xf32, #tpu.memory_space<vmem>>, vector<16x128xf32>,
    %c0_6 = arith.constant 0 : index
    %c0_7 = arith.constant 0 : index
    %6 = tpu.strided_load %arg9[%c0_6, %c0_7] {strides = array<i32: 2, 1>} : memref<18x128xf32, #tpu.memory_space<vmem>>, vector<8x128xf32>
    %c0_8 = arith.constant 0 : index
    %c0_9 = arith.constant 0 : index
    %7 = vector.load %arg2[%c0_8, %c0_9] : memref<384x64xf32, #tpu.memory_space<vmem>>, vector<128x64xf32>
    %cst_10 = arith.constant dense<0.000000e+00> : vector<8x64xf32>
    %8 = tpu.matmul %6, %7, %cst_10 {dimension_numbers = #tpu.dot_dimension_numbers<[1], [0], [0], [1], [0, 0, 1, 1], [], []>} : vector<8x128xf32>, vector<128x64xf32>, vector<8x64xf32> -> vector<8x64xf32>
    %c1_11 = arith.constant 1 : index
    %c0_12 = arith.constant 0 : index
    %9 = tpu.strided_load %arg9[%c1_11, %c0_12] {strides = array<i32: 2, 1>} : memref<18x128xf32, #tpu.memory_space<vmem>>, vector<8x128xf32>
    %c128 = arith.constant 128 : index
    %c0_13 = arith.constant 0 : index
    %10 = vector.load %arg2[%c128, %c0_13] : memref<384x64xf32, #tpu.memory_space<vmem>>, vector<128x64xf32>
    %cst_14 = arith.constant dense<0.000000e+00> : vector<8x64xf32>
    %11 = tpu.matmul %9, %10, %cst_14 {dimension_numbers = #tpu.dot_dimension_numbers<[1], [0], [0], [1], [0, 0, 1, 1], [], []>} : vector<8x128xf32>, vector<128x64xf32>, vector<8x64xf32> -> vector<8x64xf32>
    %12 = arith.addf %8, %11 : vector<8x64xf32>
    %c2 = arith.constant 2 : index
    %c0_15 = arith.constant 0 : index
    %13 = tpu.strided_load %arg9[%c2, %c0_15] {strides = array<i32: 2, 1>} : memref<18x128xf32, #tpu.memory_space<vmem>>, vector<8x128xf32>
    %c256 = arith.constant 256 : index
    %c0_16 = arith.constant 0 : index
    %14 = vector.load %arg2[%c256, %c0_16] : memref<384x64xf32, #tpu.memory_space<vmem>>, vector<128x64xf32>
    %cst_17 = arith.constant dense<0.000000e+00> : vector<8x64xf32>
    %15 = tpu.matmul %13, %14, %cst_17 {dimension_numbers = #tpu.dot_dimension_numbers<[1], [0], [0], [1], [0, 0, 1, 1], [], []>} : vector<8x128xf32>, vector<128x64xf32>, vector<8x64xf32> -> vector<8x64xf32>
    %16 = arith.addf %12, %15 : vector<8x64xf32>
    %c0_18 = arith.constant 0 : index
    %c0_19 = arith.constant 0 : index
    %17 = vector.load %arg3[%c0_18, %c0_19] : memref<1x64xf32, #tpu.memory_space<vmem>>, vector<1x64xf32>
    %18 = vector.broadcast %17 : vector<1x64xf32> to vector<8x64xf32>
    %19 = arith.addf %16, %18 : vector<8x64xf32>
    %cst_20 = arith.constant 0.000000e+00 : f32
    %20 = vector.broadcast %cst_20 : f32 to vector<8x64xf32>
    %21 = arith.cmpf oge, %19, %20 : vector<8x64xf32>
    %cst_21 = arith.constant 2.000000e-01 : f32
    %22 = vector.broadcast %cst_21 : f32 to vector<8x64xf32>
    %23 = arith.mulf %22, %19 : vector<8x64xf32>
    %24 = arith.select %21, %19, %23 : vector<8x64xi1>, vector<8x64xf32>
    %cst_22 = arith.constant 0.000000e+00 : f32
    %25 = vector.broadcast %cst_22 : f32 to vector<1x64xf32>
    %c0_23 = arith.constant 0 : index
    %c0_24 = arith.constant 0 : index
    %26 = vector.load %arg10[%c0_23, %c0_24] : memref<10x64xf32, #tpu.memory_space<vmem>>, vector<1x64xf32>
    tpu.vector_store %arg10[%c0_23, %c0_24], %25 {strides = array<i32>} : memref<10x64xf32, #tpu.memory_space<vmem>>, vector<1x64xf32>,
    %c9 = arith.constant 9 : index
    %c0_25 = arith.constant 0 : index
    %27 = vector.load %arg10[%c9, %c0_25] : memref<10x64xf32, #tpu.memory_space<vmem>>, vector<1x64xf32>
    tpu.vector_store %arg10[%c9, %c0_25], %25 {strides = array<i32>} : memref<10x64xf32, #tpu.memory_space<vmem>>, vector<1x64xf32>,
    %c1_26 = arith.constant 1 : index
    %c0_27 = arith.constant 0 : index
    %28 = vector.load %arg10[%c1_26, %c0_27] : memref<10x64xf32, #tpu.memory_space<vmem>>, vector<8x64xf32>
    tpu.vector_store %arg10[%c1_26, %c0_27], %24 {strides = array<i32>} : memref<10x64xf32, #tpu.memory_space<vmem>>, vector<8x64xf32>,
    %c0_28 = arith.constant 0 : index
    %c0_29 = arith.constant 0 : index
    %29 = vector.load %arg10[%c0_28, %c0_29] : memref<10x64xf32, #tpu.memory_space<vmem>>, vector<8x64xf32>
    %c0_30 = arith.constant 0 : index
    %c0_31 = arith.constant 0 : index
    %30 = vector.load %arg4[%c0_30, %c0_31] : memref<192x128xf32, #tpu.memory_space<vmem>>, vector<64x128xf32>
    %cst_32 = arith.constant dense<0.000000e+00> : vector<8x128xf32>
    %31 = tpu.matmul %29, %30, %cst_32 {dimension_numbers = #tpu.dot_dimension_numbers<[1], [0], [0], [1], [0, 0, 1, 1], [], []>} : vector<8x64xf32>, vector<64x128xf32>, vector<8x128xf32> -> vector<8x128xf32>
    %c1_33 = arith.constant 1 : index
    %c0_34 = arith.constant 0 : index
    %32 = vector.load %arg10[%c1_33, %c0_34] : memref<10x64xf32, #tpu.memory_space<vmem>>, vector<8x64xf32>
    %c64 = arith.constant 64 : index
    %c0_35 = arith.constant 0 : index
    %33 = vector.load %arg4[%c64, %c0_35] : memref<192x128xf32, #tpu.memory_space<vmem>>, vector<64x128xf32>
    %cst_36 = arith.constant dense<0.000000e+00> : vector<8x128xf32>
    %34 = tpu.matmul %32, %33, %cst_36 {dimension_numbers = #tpu.dot_dimension_numbers<[1], [0], [0], [1], [0, 0, 1, 1], [], []>} : vector<8x64xf32>, vector<64x128xf32>, vector<8x128xf32> -> vector<8x128xf32>
    %35 = arith.addf %31, %34 : vector<8x128xf32>
    %c2_37 = arith.constant 2 : index
    %c0_38 = arith.constant 0 : index
    %36 = vector.load %arg10[%c2_37, %c0_38] : memref<10x64xf32, #tpu.memory_space<vmem>>, vector<8x64xf32>
    %c128_39 = arith.constant 128 : index
    %c0_40 = arith.constant 0 : index
    %37 = vector.load %arg4[%c128_39, %c0_40] : memref<192x128xf32, #tpu.memory_space<vmem>>, vector<64x128xf32>
    %cst_41 = arith.constant dense<0.000000e+00> : vector<8x128xf32>
    %38 = tpu.matmul %36, %37, %cst_41 {dimension_numbers = #tpu.dot_dimension_numbers<[1], [0], [0], [1], [0, 0, 1, 1], [], []>} : vector<8x64xf32>, vector<64x128xf32>, vector<8x128xf32> -> vector<8x128xf32>
    %39 = arith.addf %35, %38 : vector<8x128xf32>
    %cst_42 = arith.constant 0.000000e+00 : f32
    %40 = vector.broadcast %cst_42 : f32 to vector<1x128xf32>
    %c0_43 = arith.constant 0 : index
    %c0_44 = arith.constant 0 : index
    %41 = vector.load %arg11[%c0_43, %c0_44] : memref<10x128xf32, #tpu.memory_space<vmem>>, vector<1x128xf32>
    tpu.vector_store %arg11[%c0_43, %c0_44], %40 {strides = array<i32>} : memref<10x128xf32, #tpu.memory_space<vmem>>, vector<1x128xf32>,
    %c9_45 = arith.constant 9 : index
    %c0_46 = arith.constant 0 : index
    %42 = vector.load %arg11[%c9_45, %c0_46] : memref<10x128xf32, #tpu.memory_space<vmem>>, vector<1x128xf32>
    tpu.vector_store %arg11[%c9_45, %c0_46], %40 {strides = array<i32>} : memref<10x128xf32, #tpu.memory_space<vmem>>, vector<1x128xf32>,
    %c1_47 = arith.constant 1 : index
    %c0_48 = arith.constant 0 : index
    %43 = vector.load %arg11[%c1_47, %c0_48] : memref<10x128xf32, #tpu.memory_space<vmem>>, vector<8x128xf32>
    tpu.vector_store %arg11[%c1_47, %c0_48], %39 {strides = array<i32>} : memref<10x128xf32, #tpu.memory_space<vmem>>, vector<8x128xf32>,
    %c0_49 = arith.constant 0 : index
    %c0_50 = arith.constant 0 : index
    %44 = tpu.strided_load %arg11[%c0_49, %c0_50] {strides = array<i32: 2, 1>} : memref<10x128xf32, #tpu.memory_space<vmem>>, vector<4x128xf32>
    %c0_51 = arith.constant 0 : index
    %c0_52 = arith.constant 0 : index
    %45 = vector.load %arg5[%c0_51, %c0_52] : memref<384x128xf32, #tpu.memory_space<vmem>>, vector<128x128xf32>
    %cst_53 = arith.constant dense<0.000000e+00> : vector<4x128xf32>
    %46 = tpu.matmul %44, %45, %cst_53 {dimension_numbers = #tpu.dot_dimension_numbers<[1], [0], [0], [1], [0, 0, 1, 1], [], []>} : vector<4x128xf32>, vector<128x128xf32>, vector<4x128xf32> -> vector<4x128xf32>
    %c1_54 = arith.constant 1 : index
    %c0_55 = arith.constant 0 : index
    %47 = tpu.strided_load %arg11[%c1_54, %c0_55] {strides = array<i32: 2, 1>} : memref<10x128xf32, #tpu.memory_space<vmem>>, vector<4x128xf32>
    %c128_56 = arith.constant 128 : index
    %c0_57 = arith.constant 0 : index
    %48 = vector.load %arg5[%c128_56, %c0_57] : memref<384x128xf32, #tpu.memory_space<vmem>>, vector<128x128xf32>
    %cst_58 = arith.constant dense<0.000000e+00> : vector<4x128xf32>
    %49 = tpu.matmul %47, %48, %cst_58 {dimension_numbers = #tpu.dot_dimension_numbers<[1], [0], [0], [1], [0, 0, 1, 1], [], []>} : vector<4x128xf32>, vector<128x128xf32>, vector<4x128xf32> -> vector<4x128xf32>
    %50 = arith.addf %46, %49 : vector<4x128xf32>
    %c2_59 = arith.constant 2 : index
    %c0_60 = arith.constant 0 : index
    %51 = tpu.strided_load %arg11[%c2_59, %c0_60] {strides = array<i32: 2, 1>} : memref<10x128xf32, #tpu.memory_space<vmem>>, vector<4x128xf32>
    %c256_61 = arith.constant 256 : index
    %c0_62 = arith.constant 0 : index
    %52 = vector.load %arg5[%c256_61, %c0_62] : memref<384x128xf32, #tpu.memory_space<vmem>>, vector<128x128xf32>
    %cst_63 = arith.constant dense<0.000000e+00> : vector<4x128xf32>
    %53 = tpu.matmul %51, %52, %cst_63 {dimension_numbers = #tpu.dot_dimension_numbers<[1], [0], [0], [1], [0, 0, 1, 1], [], []>} : vector<4x128xf32>, vector<128x128xf32>, vector<4x128xf32> -> vector<4x128xf32>
    %54 = arith.addf %50, %53 : vector<4x128xf32>
    %c0_64 = arith.constant 0 : index
    %c0_65 = arith.constant 0 : index
    %55 = vector.load %arg6[%c0_64, %c0_65] : memref<1x128xf32, #tpu.memory_space<vmem>>, vector<1x128xf32>
    %56 = vector.broadcast %55 : vector<1x128xf32> to vector<4x128xf32>
    %57 = arith.addf %54, %56 : vector<4x128xf32>
    %cst_66 = arith.constant 0.000000e+00 : f32
    %58 = vector.broadcast %cst_66 : f32 to vector<4x128xf32>
    %59 = arith.cmpf oge, %57, %58 : vector<4x128xf32>
    %cst_67 = arith.constant 2.000000e-01 : f32
    %60 = vector.broadcast %cst_67 : f32 to vector<4x128xf32>
    %61 = arith.mulf %60, %57 : vector<4x128xf32>
    %62 = arith.select %59, %57, %61 : vector<4x128xi1>, vector<4x128xf32>
    %cst_68 = arith.constant 0.000000e+00 : f32
    %63 = vector.broadcast %cst_68 : f32 to vector<1x128xf32>
    %c0_69 = arith.constant 0 : index
    %c0_70 = arith.constant 0 : index
    %64 = vector.load %arg12[%c0_69, %c0_70] : memref<6x128xf32, #tpu.memory_space<vmem>>, vector<1x128xf32>
    tpu.vector_store %arg12[%c0_69, %c0_70], %63 {strides = array<i32>} : memref<6x128xf32, #tpu.memory_space<vmem>>, vector<1x128xf32>,
    %c5 = arith.constant 5 : index
    %c0_71 = arith.constant 0 : index
    %65 = vector.load %arg12[%c5, %c0_71] : memref<6x128xf32, #tpu.memory_space<vmem>>, vector<1x128xf32>
    tpu.vector_store %arg12[%c5, %c0_71], %63 {strides = array<i32>} : memref<6x128xf32, #tpu.memory_space<vmem>>, vector<1x128xf32>,
    %c1_72 = arith.constant 1 : index
    %c0_73 = arith.constant 0 : index
    %66 = vector.load %arg12[%c1_72, %c0_73] : memref<6x128xf32, #tpu.memory_space<vmem>>, vector<4x128xf32>
    tpu.vector_store %arg12[%c1_72, %c0_73], %62 {strides = array<i32>} : memref<6x128xf32, #tpu.memory_space<vmem>>, vector<4x128xf32>,
    %c0_74 = arith.constant 0 : index
    %c0_75 = arith.constant 0 : index
    %67 = vector.load %arg12[%c0_74, %c0_75] : memref<6x128xf32, #tpu.memory_space<vmem>>, vector<4x128xf32>
    %c0_76 = arith.constant 0 : index
    %c0_77 = arith.constant 0 : index
    %68 = vector.load %arg7[%c0_76, %c0_77] : memref<384x128xf32, #tpu.memory_space<vmem>>, vector<128x128xf32>
    %cst_78 = arith.constant dense<0.000000e+00> : vector<4x128xf32>
    %69 = tpu.matmul %67, %68, %cst_78 {dimension_numbers = #tpu.dot_dimension_numbers<[1], [0], [0], [1], [0, 0, 1, 1], [], []>} : vector<4x128xf32>, vector<128x128xf32>, vector<4x128xf32> -> vector<4x128xf32>
    %c1_79 = arith.constant 1 : index
    %c0_80 = arith.constant 0 : index
    %70 = vector.load %arg12[%c1_79, %c0_80] : memref<6x128xf32, #tpu.memory_space<vmem>>, vector<4x128xf32>
    %c128_81 = arith.constant 128 : index
    %c0_82 = arith.constant 0 : index
    %71 = vector.load %arg7[%c128_81, %c0_82] : memref<384x128xf32, #tpu.memory_space<vmem>>, vector<128x128xf32>
    %cst_83 = arith.constant dense<0.000000e+00> : vector<4x128xf32>
    %72 = tpu.matmul %70, %71, %cst_83 {dimension_numbers = #tpu.dot_dimension_numbers<[1], [0], [0], [1], [0, 0, 1, 1], [], []>} : vector<4x128xf32>, vector<128x128xf32>, vector<4x128xf32> -> vector<4x128xf32>
    %73 = arith.addf %69, %72 : vector<4x128xf32>
    %c2_84 = arith.constant 2 : index
    %c0_85 = arith.constant 0 : index
    %74 = vector.load %arg12[%c2_84, %c0_85] : memref<6x128xf32, #tpu.memory_space<vmem>>, vector<4x128xf32>
    %c256_86 = arith.constant 256 : index
    %c0_87 = arith.constant 0 : index
    %75 = vector.load %arg7[%c256_86, %c0_87] : memref<384x128xf32, #tpu.memory_space<vmem>>, vector<128x128xf32>
    %cst_88 = arith.constant dense<0.000000e+00> : vector<4x128xf32>
    %76 = tpu.matmul %74, %75, %cst_88 {dimension_numbers = #tpu.dot_dimension_numbers<[1], [0], [0], [1], [0, 0, 1, 1], [], []>} : vector<4x128xf32>, vector<128x128xf32>, vector<4x128xf32> -> vector<4x128xf32>
    %77 = arith.addf %73, %76 : vector<4x128xf32>
    %c0_89 = arith.constant 0 : index
    %c0_90 = arith.constant 0 : index
    %c0_91 = arith.constant 0 : index
    %78 = vector.load %arg8[%c0_89, %c0_90, %c0_91] : memref<1x4x128xf32, #tpu.memory_space<vmem>>, vector<1x4x128xf32>
    %79 = vector.shape_cast %78 : vector<1x4x128xf32> to vector<4x128xf32>
    %80 = vector.shape_cast %77 : vector<4x128xf32> to vector<1x4x128xf32>
    tpu.vector_store %arg8[%c0_89, %c0_90, %c0_91], %80 {strides = array<i32>} : memref<1x4x128xf32, #tpu.memory_space<vmem>>, vector<1x4x128xf32>,
    return
  }
  func.func @transform_0(%arg0: i32) -> (i32, i32, i32) {
    %c0_i32 = arith.constant 0 : i32
    %c0_i32_0 = arith.constant 0 : i32
    %c0_i32_1 = arith.constant 0 : i32
    return %arg0, %c0_i32, %c0_i32_0 : i32, i32, i32
  }
  func.func @transform_1(%arg0: i32) -> (i32, i32) {
    %c0_i32 = arith.constant 0 : i32
    %c0_i32_0 = arith.constant 0 : i32
    %c0_i32_1 = arith.constant 0 : i32
    return %c0_i32, %c0_i32_0 : i32, i32
  }
  func.func @transform_2(%arg0: i32) -> (i32, i32) {
    %c0_i32 = arith.constant 0 : i32
    %c0_i32_0 = arith.constant 0 : i32
    %c0_i32_1 = arith.constant 0 : i32
    return %c0_i32, %c0_i32_0 : i32, i32
  }
  func.func @transform_3(%arg0: i32) -> (i32, i32) {
    %c0_i32 = arith.constant 0 : i32
    %c0_i32_0 = arith.constant 0 : i32
    %c0_i32_1 = arith.constant 0 : i32
    return %c0_i32, %c0_i32_0 : i32, i32
  }
  func.func @transform_4(%arg0: i32) -> (i32, i32) {
    %c0_i32 = arith.constant 0 : i32
    %c0_i32_0 = arith.constant 0 : i32
    %c0_i32_1 = arith.constant 0 : i32
    return %c0_i32, %c0_i32_0 : i32, i32
  }
  func.func @transform_5(%arg0: i32) -> (i32, i32) {
    %c0_i32 = arith.constant 0 : i32
    %c0_i32_0 = arith.constant 0 : i32
    %c0_i32_1 = arith.constant 0 : i32
    return %c0_i32, %c0_i32_0 : i32, i32
  }
  func.func @transform_6(%arg0: i32) -> (i32, i32) {
    %c0_i32 = arith.constant 0 : i32
    %c0_i32_0 = arith.constant 0 : i32
    %c0_i32_1 = arith.constant 0 : i32
    return %c0_i32, %c0_i32_0 : i32, i32
  }
  func.func @transform_7(%arg0: i32) -> (i32, i32, i32) {
    %c0_i32 = arith.constant 0 : i32
    %c0_i32_0 = arith.constant 0 : i32
    %c0_i32_1 = arith.constant 0 : i32
    return %arg0, %c0_i32, %c0_i32_0 : i32, i32, i32
  }
}

</mosaic_0001>

<bundles_post_ra>
// kernel: ds4_down_forward.1
= control target key start
LH: loop header
LB: loop body
LE: loop exit
PB: predicated region body
PF: predicated region fallthrough
CT: control target
= control target key end

     0   :  { %s875_s24 = smov 0   ;;  %s1418_s0 = inlined_call_operand.vmem [shape: f32[2,16,128], index: 0, kind: input, shape index: {}]   ;;  %s1419_s1 = inlined_call_operand.vmem [shape: f32[384,64], index: 1, kind: input, shape index: {}]   ;;  %s1420_s2 = inlined_call_operand.vmem [shape: f32[1,64], index: 2, kind: input, shape index: {}]   ;;  %s1421_s3 = inlined_call_operand.vmem [shape: f32[192,128], index: 3, kind: input, shape index: {}]   ;;  %s1422_s4 = inlined_call_operand.vmem [shape: f32[384,128], index: 4, kind: input, shape index: {}]   ;;  %s1423_s5 = inlined_call_operand.vmem [shape: f32[1,128], index: 5, kind: input, shape index: {}]   ;;  %s1424_s6 = inlined_call_operand.vmem [shape: f32[384,128], index: 6, kind: input, shape index: {}]   ;;  %s1425_s7 = inlined_call_operand.vmem [shape: f32[2,4,128], index: 7, kind: output, shape index: {}]  }
   0x1 LB: > { %s801_s25 = sadd.s32 4294967295, %s832_s24   ;;  %p805_p0 = scmp.ge.s32.totalorder %s832_s24, 1  ;;  %s832_s24 = sphi %s875_s24, %s17_s24  }
   0x2   : > { %p237_p1 = scmp.lt.s32.totalorder %s832_s24, 3 }
   0x4   : > { %p238_p2 = pnand %p805_p0, %p237_p1 }
   0x5   : > { %p892_p3 = scmp.lt.s32.totalorder (!%p238_p2), %s801_s25, 1 }
   0x6   : > { %241 = sbr.rel (%p238_p2) target bundleno = 628 (0x274), region = 48 }
   0xb   : > { %v375_v0 = vld [vmem:[%s1419_s1 + $0x178] sm:$0xff]  ;;  %v374_v1 = vld [vmem:[%s1419_s1 + $0x170] sm:$0xff]  ;;  %v834_v5 = vmov 0.0   ;;  %v373_v6 = vld [vmem:[%s1419_s1 + $0x168] sm:$0xff]  ;;  %s1428_s25 = smov (!%p892_p3, %s801_s25), 1  ;;  %vm405_vm0 = vcmask 516096  }
   0xc   : > { %v317_v2 = vld [vmem:[%s1419_s1 + $0xf8] sm:$0xff]  ;;  %376 = vmatpush.msra.mxu2 %v375_v0  ;;  %v316_v4 = vld [vmem:[%s1419_s1 + $0xf0] sm:$0xff]  ;;  %279 = vst [vmem:[#allocation2] sm:$0x1] %v834_v5  ;;  %v315_v8 = vld [vmem:[%s1419_s1 + $0xe8] sm:$0xff]  ;;  %s814_s17 = sshll.u32 %s1428_s25, 4 }
   0xd   : > { %318 = vmatpush.msra.mxu0 %v317_v2  ;;  %v299_v3 = vld [vmem:[%s1419_s1 + $0x78] sm:$0xff]  ;;  %v298_v7 = vld [vmem:[%s1419_s1 + $0x70] sm:$0xff]  ;;  %v297_v9 = vld [vmem:[%s1419_s1 + $0x68] sm:$0xff]  ;;  %507 = vst [vmem:[#allocation4] sm:$0x1] %v834_v5  ;;  %s272_s30 = scalar_lea.vmem %s1418_s0, %s814_s17  ;;  %vm408_vm2 = vcmask 523264  }
   0xe   : > { %338 = vmatpush.msra.mxu1 %v299_v3  ;;  %377 = vmatpush.msra.mxu2 %v374_v1  ;;  %v372_v10 = vld [vmem:[%s1419_s1 + $0x160] sm:$0xff]  ;;  %632 = vst [vmem:[#allocation5] sm:$0x1] %v834_v5  ;;  %v371_v13 = vld [vmem:[%s1419_s1 + $0x158] sm:$0xff]  ;;  %v370_v16 = vld [vmem:[%s1419_s1 + $0x150] sm:$0xff]  ;;  %s808_s12 = sshll.u32 %s1428_s25, 2 }
   0xf   : > { %319 = vmatpush.msra.mxu0 %v316_v4  ;;  %v314_v11 = vld [vmem:[%s1419_s1 + $0xe0] sm:$0xff]  ;;  %v313_v14 = vld [vmem:[%s1419_s1 + $0xd8] sm:$0xff]  ;;  %633 = vst [vmem:[#allocation5 + $0x5] sm:$0x1] %v834_v5  ;;  %v312_v17 = vld [vmem:[%s1419_s1 + $0xd0] sm:$0xff]  ;;  %s276_s15 = scalar_lea.vmem %s1425_s7, %s808_s12 }
  0x10   : > { %339 = vmatpush.msra.mxu1 %v298_v7  ;;  %378 = vmatpush.msra.mxu2 %v373_v6  ;;  %v296_v12 = vld [vmem:[%s1419_s1 + $0x60] sm:$0xff]  ;;  %v295_v15 = vld [vmem:[%s1419_s1 + $0x58] sm:$0xff]  ;;  %v294_v18 = vld [vmem:[%s1419_s1 + $0x50] sm:$0xff]  ;;  %407 = vst.msk [vmem:[#allocation3 + $0x9] sm:$0x1] %vm405_vm0, %v834_v5 }
  0x11   : > { %320 = vmatpush.msra.mxu0 %v315_v8  ;;  %v369_v19 = vld [vmem:[%s1419_s1 + $0x148] sm:$0xff]  ;;  %v368_v22 = vld [vmem:[%s1419_s1 + $0x140] sm:$0xff]  ;;  %v367_v25 = vld [vmem:[%s1419_s1 + $0x138] sm:$0xff]  ;;  %406 = vst.msk [vmem:[#allocation3] sm:$0x1] %vm405_vm0, %v834_v5 }
  0x12   : > { %340 = vmatpush.msra.mxu1 %v297_v9  ;;  %379 = vmatpush.msra.mxu2 %v372_v10  ;;  %v311_v20 = vld [vmem:[%s1419_s1 + $0xc8] sm:$0xff]  ;;  %v310_v23 = vld [vmem:[%s1419_s1 + $0xc0] sm:$0xff]  ;;  %v309_v26 = vld [vmem:[%s1419_s1 + $0xb8] sm:$0xff] }
  0x13   : > { %321 = vmatpush.msra.mxu0 %v314_v11  ;;  %v293_v21 = vld [vmem:[%s1419_s1 + $0x48] sm:$0xff]  ;;  %v292_v24 = vld [vmem:[%s1419_s1 + $0x40] sm:$0xff]  ;;  %v366_v28 = vld [vmem:[%s1419_s1 + $0x130] sm:$0xff] }
  0x14   : > { %341 = vmatpush.msra.mxu1 %v296_v12  ;;  %380 = vmatpush.msra.mxu2 %v371_v13  ;;  %v277_v27 = vld [vmem:[%s272_s30] sm:$0xff]  ;;  %v291_v29 = vld [vmem:[%s1419_s1 + $0x38] sm:$0xff]  ;;  %v278_v30 = vld [vmem:[%s272_s30 + $0x8] sm:$0xff] }
  0x15   : > { %322 = vmatpush.msra.mxu0 %v313_v14  ;;  %281 = vst [vmem:[#allocation2 + $0x1] sm:$0xff] %v277_v27  ;;  %v308_v31 = vld [vmem:[%s1419_s1 + $0xb0] sm:$0xff]  ;;  %v427_v33 = vld [vmem:[%s1421_s3 + $0x78] sm:$0xff]  ;;  %v365_v35 = vld [vmem:[%s1419_s1 + $0x128] sm:$0xff] }
  0x16   : > { %342 = vmatpush.msra.mxu1 %v295_v15  ;;  %381 = vmatpush.msra.mxu2 %v370_v16  ;;  %v290_v32 = vld [vmem:[%s1419_s1 + $0x30] sm:$0xff]  ;;  %282 = vst [vmem:[#allocation2 + $0x9] sm:$0xff] %v278_v30  ;;  %v307_v36 = vld [vmem:[%s1419_s1 + $0xa8] sm:$0xff]  ;;  %v364_v38 = vld [vmem:[%s1419_s1 + $0x120] sm:$0xff] }
  0x17   : > { %323 = vmatpush.msra.mxu0 %v312_v17  ;;  %v426_v34 = vld [vmem:[%s1421_s3 + $0x70] sm:$0xff]  ;;  %439 = vmatpush.msra.mxu3 %v427_v33  ;;  %v289_v37 = vld [vmem:[%s1419_s1 + $0x28] sm:$0xff]  ;;  %v306_v39 = vld [vmem:[%s1419_s1 + $0xa0] sm:$0xff] }
  0x18   : > { %343 = vmatpush.msra.mxu1 %v294_v18  ;;  %382 = vmatpush.msra.mxu2 %v369_v19  ;;  %v288_v40 = vld [vmem:[%s1419_s1 + $0x20] sm:$0xff]  ;;  %v363_v41 = vld [vmem:[%s1419_s1 + $0x118] sm:$0xff]  ;;  %v362_v44 = vld [vmem:[%s1419_s1 + $0x110] sm:$0xff] }
  0x19   : > { %324 = vmatpush.msra.mxu0 %v311_v20  ;;  %440 = vmatpush.msra.mxu3 %v426_v34  ;;  %v305_v42 = vld [vmem:[%s1419_s1 + $0x98] sm:$0xff]  ;;  %v304_v45 = vld [vmem:[%s1419_s1 + $0x90] sm:$0xff]  ;;  %v361_v47 = vld [vmem:[%s1419_s1 + $0x108] sm:$0xff] }
  0x1a   : > { %344 = vmatpush.msra.mxu1 %v293_v21  ;;  %383 = vmatpush.msra.mxu2 %v368_v22  ;;  %v287_v43 = vld [vmem:[%s1419_s1 + $0x18] sm:$0xff]  ;;  %v286_v46 = vld [vmem:[%s1419_s1 + $0x10] sm:$0xff]  ;;  %v303_v48 = vld [vmem:[%s1419_s1 + $0x88] sm:$0xff] }
  0x1b   : > { %325 = vmatpush.msra.mxu0 %v310_v23  ;;  %v285_v49 = vld [vmem:[%s1419_s1 + $0x8] sm:$0xff]  ;;  %v360_v50 = vld [vmem:[%s1419_s1 + $0x100] sm:$0xff]  ;;  %v482_v58 = vld [vmem:[%s1421_s3 + $0xb8] sm:$0xff] }
  0x1c   : > { %345 = vmatpush.msra.mxu1 %v292_v24  ;;  %384 = vmatpush.msra.mxu2 %v367_v25  ;;  %v302_v51 = vld [vmem:[%s1419_s1 + $0x80] sm:$0xff]  ;;  %v425_v56 = vld [vmem:[%s1421_s3 + $0x68] sm:$0xff]  ;;  %v423_v59 = vld [vmem:[%s1421_s3 + $0x58] sm:$0xff] }
  0x1d   : > { %326 = vmatpush.msra.mxu0 %v309_v26  ;;  %v359_v52 = vld [vmem:[#allocation2 + $0x2] ss:$2 sm:$0xff]  ;;  %v301_v54 = vld [vmem:[#allocation2 + $0x1] ss:$2 sm:$0xff]  ;;  %441 = vmatpush.msra.mxu3 %v425_v56  ;;  %v418_v2 = vld [vmem:[%s1421_s3 + $0x38] sm:$0xff] }
  0x1e   : > { %346 = vmatpush.msra.mxu1 %v291_v29  ;;  %385 = vmatpush.msra.mxu2 %v366_v28  ;;  %v284_v53 = vld [vmem:[%s1419_s1] sm:$0xff]  ;;  %v481_v60 = vld [vmem:[%s1421_s3 + $0xb0] sm:$0xff]  ;;  %v480_v62 = vld [vmem:[%s1421_s3 + $0xa8] sm:$0xff] }
  0x1f   : > { %327 = vmatpush.msra.mxu0 %v308_v31  ;;  %v283_v55 = vld [vmem:[#allocation2] ss:$2 sm:$0xff]  ;;  %v422_v61 = vld [vmem:[%s1421_s3 + $0x50] sm:$0xff]  ;;  %v478_v3 = vld [vmem:[%s1421_s3 + $0x98] sm:$0xff] }
  0x20   : > { %347 = vmatpush.msra.mxu1 %v290_v32  ;;  %386 = vmatpush.msra.mxu2 %v365_v35  ;;  %v424_v57 = vld [vmem:[%s1421_s3 + $0x60] sm:$0xff]  ;;  %v421_v63 = vld [vmem:[%s1421_s3 + $0x48] sm:$0xff]  ;;  %v417_v4 = vld [vmem:[%s1421_s3 + $0x30] sm:$0xff] }
  0x21   : > { %328 = vmatpush.msra.mxu0 %v307_v36  ;;  %442 = vmatpush.msra.mxu3 %v424_v57  ;;  %v479_v0 = vld [vmem:[%s1421_s3 + $0xa0] sm:$0xff]  ;;  %v477_v6 = vld [vmem:[%s1421_s3 + $0x90] sm:$0xff]  ;;  %v416_v7 = vld [vmem:[%s1421_s3 + $0x28] sm:$0xff] }
  0x22   : > { %348 = vmatpush.msra.mxu1 %v289_v37  ;;  %387 = vmatpush.msra.mxu2 %v364_v38  ;;  %v420_v1 = vld [vmem:[%s1421_s3 + $0x40] sm:$0xff]  ;;  %v476_v8 = vld [vmem:[%s1421_s3 + $0x88] sm:$0xff]  ;;  %v414_v5 = vld [vmem:[%s1421_s3 + $0x18] sm:$0xff] }
  0x23   : > { %329 = vmatpush.msra.mxu0 %v306_v39  ;;  %443 = vmatpush.msra.mxu3 %v423_v59  ;;  %v415_v9 = vld [vmem:[%s1421_s3 + $0x20] sm:$0xff]  ;;  %v413_v11 = vld [vmem:[%s1421_s3 + $0x10] sm:$0xff]  ;;  %v412_v12 = vld [vmem:[%s1421_s3 + $0x8] sm:$0xff] }
  0x24   : > { %349 = vmatpush.msra.mxu1 %v288_v40  ;;  %388 = vmatpush.msra.mxu2 %v363_v41  ;;  %v475_v10 = vld [vmem:[%s1421_s3 + $0x80] sm:$0xff]  ;;  %v544_v14 = vld [vmem:[%s1422_s4 + $0xf8] sm:$0xff]  ;;  %v543_v16 = vld [vmem:[%s1422_s4 + $0xf0] sm:$0xff] }
  0x25   : > { %330 = vmatpush.msra.mxu0 %v305_v42  ;;  %444 = vmatpush.msra.mxu3 %v422_v61  ;;  %v411_v13 = vld [vmem:[%s1421_s3] sm:$0xff]  ;;  %v526_v15 = vld [vmem:[%s1422_s4 + $0x78] sm:$0xff]  ;;  %v525_v17 = vld [vmem:[%s1422_s4 + $0x70] sm:$0xff] }
  0x26   : > { %350 = vmatpush.msra.mxu1 %v287_v43  ;;  %389 = vmatpush.msra.mxu2 %v362_v44  ;;  %v824_v21 = vld [vmem:[%s1420_s2] ss:$0 sm:$0xff]  ;;  %v602_v27 = vld [vmem:[%s1422_s4 + $0x178] sm:$0xff]  ;;  %v601_v30 = vld [vmem:[%s1422_s4 + $0x170] sm:$0xff] }
  0x27   : > { %331 = vmatpush.msra.mxu0 %v304_v45  ;;  %445 = vmatpush.msra.mxu3 %v421_v63  ;;  %v542_v32 = vld [vmem:[%s1422_s4 + $0xe8] sm:$0xff]  ;;  %v541_v35 = vld [vmem:[%s1422_s4 + $0xe0] sm:$0xff]  ;;  %v540_v38 = vld [vmem:[%s1422_s4 + $0xd8] sm:$0xff] }
  0x28   : > { %351 = vmatpush.msra.mxu1 %v286_v46  ;;  %390 = vmatpush.msra.mxu2 %v361_v47  ;;  %v524_v33 = vld [vmem:[%s1422_s4 + $0x68] sm:$0xff]  ;;  %v523_v36 = vld [vmem:[%s1422_s4 + $0x60] sm:$0xff]  ;;  %v522_v39 = vld [vmem:[%s1422_s4 + $0x58] sm:$0xff] }
  0x29   : > { %332 = vmatpush.msra.mxu0 %v303_v48  ;;  %446 = vmatpush.msra.mxu3 %v420_v1  ;;  %v600_v34 = vld [vmem:[%s1422_s4 + $0x168] sm:$0xff]  ;;  %v599_v37 = vld [vmem:[%s1422_s4 + $0x160] sm:$0xff]  ;;  %v598_v40 = vld [vmem:[%s1422_s4 + $0x158] sm:$0xff] }
  0x2a   : > { %352 = vmatpush.msra.mxu1 %v285_v49  ;;  %391 = vmatpush.msra.mxu2 %v360_v50  ;;  %v539_v41 = vld [vmem:[%s1422_s4 + $0xd0] sm:$0xff]  ;;  %v538_v44 = vld [vmem:[%s1422_s4 + $0xc8] sm:$0xff]  ;;  %v537_v47 = vld [vmem:[%s1422_s4 + $0xc0] sm:$0xff] }
  0x2b   : > { %333 = vmatpush.msra.mxu0 %v302_v51  ;;  %392 = vmatmul.f32.vlgmr.msra.gmra.mxu2 %v359_v52  ;;  %v521_v42 = vld [vmem:[%s1422_s4 + $0x50] sm:$0xff]  ;;  %v520_v45 = vld [vmem:[%s1422_s4 + $0x48] sm:$0xff]  ;;  %v519_v48 = vld [vmem:[%s1422_s4 + $0x40] sm:$0xff] }
  0x2c   : > { %353 = vmatpush.msra.mxu1 %v284_v53  ;;  %334 = vmatmul.f32.vlgmr.msra.gmra.mxu0 %v301_v54  ;;  %v597_v43 = vld [vmem:[%s1422_s4 + $0x150] sm:$0xff]  ;;  %v596_v46 = vld [vmem:[%s1422_s4 + $0x148] sm:$0xff]  ;;  %v595_v49 = vld [vmem:[%s1422_s4 + $0x140] sm:$0xff] }
  0x2d   : > { %354 = vmatmul.f32.vlgmr.msra.gmra.mxu1 %v283_v55  ;;  %494 = vmatpush.msrb.mxu0 %v482_v58  ;;  %v536_v50 = vld [vmem:[%s1422_s4 + $0xb8] sm:$0xff]  ;;  %v535_v53 = vld [vmem:[%s1422_s4 + $0xb0] sm:$0xff]  ;;  %v534_v56 = vld [vmem:[%s1422_s4 + $0xa8] sm:$0xff] }
  0x2e   : > { %462 = vmatpush.msrb.mxu3 %v418_v2  ;;  %545 = vmatpush.msrb.mxu1 %v544_v14  ;;  %v518_v51 = vld [vmem:[%s1422_s4 + $0x38] sm:$0xff]  ;;  %v517_v54 = vld [vmem:[%s1422_s4 + $0x30] sm:$0xff]  ;;  %v516_v57 = vld [vmem:[%s1422_s4 + $0x28] sm:$0xff] }
  0x2f   : > { %495 = vmatpush.msrb.mxu0 %v481_v60  ;;  %565 = vmatpush.msrb.mxu2 %v526_v15  ;;  %v594_v52 = vld [vmem:[%s1422_s4 + $0x138] sm:$0xff]  ;;  %v593_v55 = vld [vmem:[%s1422_s4 + $0x130] sm:$0xff]  ;;  %v592_v58 = vld [vmem:[%s1422_s4 + $0x128] sm:$0xff] }
  0x30   : > { %463 = vmatpush.msrb.mxu3 %v417_v4  ;;  %546 = vmatpush.msrb.mxu1 %v543_v16  ;;  %v533_v59 = vld [vmem:[%s1422_s4 + $0xa0] sm:$0xff]  ;;  %v514_v63 = vld [vmem:[%s1422_s4 + $0x18] sm:$0xff]  ;;  %v531_v1 = vld [vmem:[%s1422_s4 + $0x90] sm:$0xff] }
  0x31   : > { %496 = vmatpush.msrb.mxu0 %v480_v62  ;;  %566 = vmatpush.msrb.mxu2 %v525_v17  ;;  %v515_v60 = vld [vmem:[%s1422_s4 + $0x20] sm:$0xff]  ;;  %v532_v62 = vld [vmem:[%s1422_s4 + $0x98] sm:$0xff]  ;;  %v513_v2 = vld [vmem:[%s1422_s4 + $0x10] sm:$0xff] }
  0x32   : > { %464 = vmatpush.msrb.mxu3 %v416_v7  ;;  %547 = vmatpush.msrb.mxu1 %v542_v32  ;;  %v591_v61 = vld [vmem:[%s1422_s4 + $0x120] sm:$0xff]  ;;  %v530_v4 = vld [vmem:[%s1422_s4 + $0x88] sm:$0xff]  ;;  %v650_v14 = vld [vmem:[%s1424_s6 + $0x70] sm:$0xff] }
  0x33   : > { %497 = vmatpush.msrb.mxu0 %v479_v0  ;;  %567 = vmatpush.msrb.mxu2 %v524_v33  ;;  %v590_v0 = vld [vmem:[%s1422_s4 + $0x118] sm:$0xff]  ;;  %v588_v7 = vld [vmem:[%s1422_s4 + $0x108] sm:$0xff]  ;;  %v724_v15 = vld [vmem:[%s1424_s6 + $0x170] sm:$0xff] }
  0x34   : > { %465 = vmatpush.msrb.mxu3 %v415_v9  ;;  %548 = vmatpush.msrb.mxu1 %v541_v35  ;;  %v511_v9 = vld [vmem:[%s1422_s4] sm:$0xff]  ;;  %v666_v16 = vld [vmem:[%s1424_s6 + $0xe8] sm:$0xff]  ;;  %v721_v32 = vld [vmem:[%s1424_s6 + $0x158] sm:$0xff] }
  0x35   : > { %498 = vmatpush.msrb.mxu0 %v478_v3  ;;  %568 = vmatpush.msrb.mxu2 %v523_v36  ;;  %v589_v3 = vld [vmem:[%s1422_s4 + $0x110] sm:$0xff]  ;;  %v649_v17 = vld [vmem:[%s1424_s6 + $0x68] sm:$0xff] }
  0x36   : > { %466 = vmatpush.msrb.mxu3 %v414_v5  ;;  %549 = vmatpush.msrb.mxu1 %v540_v38  ;;  %v668_v5 = vld [vmem:[%s1424_s6 + $0xf8] sm:$0xff]  ;;  %v663_v33 = vld [vmem:[%s1424_s6 + $0xd0] sm:$0xff]  ;;  %v662_v36 = vld [vmem:[%s1424_s6 + $0xc8] sm:$0xff] }
  0x37   : > { %499 = vmatpush.msrb.mxu0 %v477_v6  ;;  %569 = vmatpush.msrb.mxu2 %v522_v39  ;;  %v512_v6 = vld [vmem:[%s1422_s4 + $0x8] sm:$0xff]  ;;  %v720_v35 = vld [vmem:[%s1424_s6 + $0x150] sm:$0xff]  ;;  %v661_v39 = vld [vmem:[%s1424_s6 + $0xc0] sm:$0xff] }
  0x38   : > { %467 = vmatpush.msrb.mxu3 %v413_v11  ;;  %550 = vmatpush.msrb.mxu1 %v539_v41  ;;  %v651_v11 = vld [vmem:[%s1424_s6 + $0x78] sm:$0xff]  ;;  %v719_v38 = vld [vmem:[%s1424_s6 + $0x148] sm:$0xff]  ;;  %v718_v41 = vld [vmem:[%s1424_s6 + $0x140] sm:$0xff] }
  0x39   : > { %500 = vmatpush.msrb.mxu0 %v476_v8  ;;  %570 = vmatpush.msrb.mxu2 %v521_v42  ;;  %v529_v8 = vld [vmem:[%s1422_s4 + $0x80] sm:$0xff]  ;;  %v660_v42 = vld [vmem:[%s1424_s6 + $0xb8] sm:$0xff] }
  0x3a   : > { %468 = vmatpush.msrb.mxu3 %v412_v12  ;;  %551 = vmatpush.msrb.mxu1 %v538_v44  ;;  %v725_v12 = vld [vmem:[%s1424_s6 + $0x178] sm:$0xff] }
  0x3b   : > { %501 = vmatpush.msrb.mxu0 %v475_v10  ;;  %571 = vmatpush.msrb.mxu2 %v520_v45  ;;  %v587_v10 = vld [vmem:[%s1422_s4 + $0x100] sm:$0xff]  ;;  %v717_v44 = vld [vmem:[%s1424_s6 + $0x138] sm:$0xff]  ;;  %v659_v45 = vld [vmem:[%s1424_s6 + $0xb0] sm:$0xff] }
  0x3c   : > { %469 = vmatpush.msrb.mxu3 %v411_v13  ;;  %552 = vmatpush.msrb.mxu1 %v537_v47  ;;  %v667_v13 = vld [vmem:[%s1424_s6 + $0xf0] sm:$0xff] }
  0x3d   : > { %572 = vmatpush.msrb.mxu2 %v519_v48  ;;  %669 = vmatpush.msra.mxu0 %v668_v5  ;;  %v716_v47 = vld [vmem:[%s1424_s6 + $0x130] sm:$0xff]  ;;  %v658_v48 = vld [vmem:[%s1424_s6 + $0xa8] sm:$0xff] }
  0x3e   : > { %553 = vmatpush.msrb.mxu1 %v536_v50  ;;  %v715_v50 = vld [vmem:[%s1424_s6 + $0x128] sm:$0xff] }
  0x3f   : > { %573 = vmatpush.msrb.mxu2 %v518_v51  ;;  %670 = vmatpush.msra.mxu0 %v667_v13  ;;  %v657_v51 = vld [vmem:[%s1424_s6 + $0xa0] sm:$0xff] }
  0x40   : > { %554 = vmatpush.msrb.mxu1 %v535_v53  ;;  %v714_v53 = vld [vmem:[%s1424_s6 + $0x120] sm:$0xff] }
  0x41   : > { %574 = vmatpush.msrb.mxu2 %v517_v54  ;;  %671 = vmatpush.msra.mxu0 %v666_v16  ;;  %v656_v54 = vld [vmem:[%s1424_s6 + $0x98] sm:$0xff] }
  0x42   : > { %555 = vmatpush.msrb.mxu1 %v534_v56  ;;  %v713_v56 = vld [vmem:[%s1424_s6 + $0x118] sm:$0xff] }
  0x43   : > { %575 = vmatpush.msrb.mxu2 %v516_v57  ;;  %v655_v57 = vld [vmem:[%s1424_s6 + $0x90] sm:$0xff] }
  0x44   : > { %556 = vmatpush.msrb.mxu1 %v533_v59  ;;  %v712_v59 = vld [vmem:[%s1424_s6 + $0x110] sm:$0xff] }
  0x45   : > { %576 = vmatpush.msrb.mxu2 %v515_v60  ;;  %v654_v60 = vld [vmem:[%s1424_s6 + $0x88] sm:$0xff] }
  0x46   : > { %557 = vmatpush.msrb.mxu1 %v532_v62  ;;  %v711_v62 = vld [vmem:[%s1424_s6 + $0x108] sm:$0xff] }
  0x47   : > { %577 = vmatpush.msrb.mxu2 %v514_v63  ;;  %v653_v63 = vld [vmem:[%s1424_s6 + $0x80] sm:$0xff] }
  0x48   : > { %558 = vmatpush.msrb.mxu1 %v531_v1  ;;  %v710_v1 = vld [vmem:[%s1424_s6 + $0x100] sm:$0xff] }
  0x49   : > { %578 = vmatpush.msrb.mxu2 %v513_v2 }
  0x4a   : > { %559 = vmatpush.msrb.mxu1 %v530_v4 }
  0x4b   : > { %579 = vmatpush.msrb.mxu2 %v512_v6  ;;  %v825_v6 = vld [vmem:[%s1423_s5] ss:$0 sm:$0xff] }
  0x4c   : > { %560 = vmatpush.msrb.mxu1 %v529_v8 }
  0x4d   : > { %580 = vmatpush.msrb.mxu2 %v511_v9 }
  0x4e   : > { %689 = vmatpush.msra.mxu1 %v651_v11 }
  0x4f   : > { %726 = vmatpush.msra.mxu2 %v725_v12 }
  0x50   : > { %690 = vmatpush.msra.mxu1 %v650_v14 }
  0x51   : > { %727 = vmatpush.msra.mxu2 %v724_v15 }
  0x52   : > { %691 = vmatpush.msra.mxu1 %v649_v17 }
  0xa9   : > { %v335_v18 = vpop.f32.mrf.mxu0 }
  0xaa   : > { %v355_v19 = vpop.f32.mrf.mxu1 }
  0xab   : > { %v356_v20 = vadd.f32 %v355_v19, %v335_v18  ;;  %v723_v18 = vld [vmem:[%s1424_s6 + $0x168] sm:$0xff]  ;;  %v665_v19 = vld [vmem:[%s1424_s6 + $0xe0] sm:$0xff] }
  0xac   : > { %728 = vmatpush.msra.mxu2 %v723_v18  ;;  %672 = vmatpush.msra.mxu0 %v665_v19 }
  0xae   : > { %v393_v22 = vpop.f32.mrf.mxu2 }
  0xaf   : > { %v396_v23 = vadd.f32 %v393_v22, %v356_v20  ;;  %v648_v20 = vld [vmem:[%s1424_s6 + $0x60] sm:$0xff] }
  0xb0   : > { %692 = vmatpush.msra.mxu1 %v648_v20 }
  0xb1   : > { %v401_v24 = vadd.f32 %v824_v21, %v396_v23  ;;  %v722_v21 = vld [vmem:[%s1424_s6 + $0x160] sm:$0xff] }
  0xb2   : > { %729 = vmatpush.msra.mxu2 %v722_v21 }
  0xb3   : > { %vm402_vm1 = vcmp.ge.f32.partialorder %v401_v24, 0.0  ;;  %v403_v25 = vmul.f32 0.2, %v401_v24 }
  0xb4   : > { %730 = vmatpush.msra.mxu2 %v721_v32 }
  0xb5   : > { %v404_v26 = vsel %vm402_vm1, %v401_v24, %v403_v25 }
  0xb6   : > { %409 = vst.msk [vmem:[#allocation3 + $0x1] sm:$0xff] %vm408_vm2, %v404_v26  ;;  %731 = vmatpush.msra.mxu2 %v720_v35 }
  0xb8   : > { %732 = vmatpush.msra.mxu2 %v719_v38 }
  0xba   : > { %733 = vmatpush.msra.mxu2 %v718_v41 }
  0xbc   : > { %734 = vmatpush.msra.mxu2 %v717_v44 }
  0xbd   : > { %v419_v28 = vld [vmem:[#allocation3 + $0x1] sm:$0xff] }
  0xbe   : > { %v474_v29 = vld [vmem:[#allocation3 + $0x2] sm:$0xff]  ;;  %809 = vmatmul.msk.f32.vlgmr.msra.gmra.mxu3 %vm408_vm2, %v419_v28  ;;  %735 = vmatpush.msra.mxu2 %v716_v47 }
  0xbf   : > { %811 = vmatmul.msk.f32.vlgmr.msrb.gmra.mxu0 %vm408_vm2, %v474_v29  ;;  %603 = vmatpush.msra.mxu3 %v602_v27  ;;  %v410_v31 = vld [vmem:[#allocation3] sm:$0xff] }
  0xc0   : > { %736 = vmatpush.msra.mxu2 %v715_v50 }
  0xc1   : > { %604 = vmatpush.msra.mxu3 %v601_v30  ;;  %v664_v30 = vld [vmem:[%s1424_s6 + $0xd8] sm:$0xff] }
  0xc2   : > { %673 = vmatpush.msra.mxu0 %v664_v30  ;;  %737 = vmatpush.msra.mxu2 %v714_v53 }
  0xc3   : > { %605 = vmatpush.msra.mxu3 %v600_v34  ;;  %v646_v34 = vld [vmem:[%s1424_s6 + $0x50] sm:$0xff] }
  0xc4   : > { %674 = vmatpush.msra.mxu0 %v663_v33  ;;  %738 = vmatpush.msra.mxu2 %v713_v56 }
  0xc5   : > { %606 = vmatpush.msra.mxu3 %v599_v37  ;;  %v645_v37 = vld [vmem:[%s1424_s6 + $0x48] sm:$0xff] }
  0xc6   : > { %810 = vmatmul.msk.f32.vlgmr.msrb.gmra.mxu3 %vm408_vm2, %v410_v31  ;;  %v647_v31 = vld [vmem:[%s1424_s6 + $0x58] sm:$0xff]  ;;  %675 = vmatpush.msra.mxu0 %v662_v36 }
  0xc7   : > { %607 = vmatpush.msra.mxu3 %v598_v40  ;;  %693 = vmatpush.msra.mxu1 %v647_v31  ;;  %v644_v40 = vld [vmem:[%s1424_s6 + $0x40] sm:$0xff] }
  0xc8   : > { %676 = vmatpush.msra.mxu0 %v661_v39  ;;  %739 = vmatpush.msra.mxu2 %v712_v59 }
  0xc9   : > { %608 = vmatpush.msra.mxu3 %v597_v43  ;;  %694 = vmatpush.msra.mxu1 %v646_v34  ;;  %v643_v43 = vld [vmem:[%s1424_s6 + $0x38] sm:$0xff] }
  0xca   : > { %677 = vmatpush.msra.mxu0 %v660_v42  ;;  %740 = vmatpush.msra.mxu2 %v711_v62 }
  0xcb   : > { %609 = vmatpush.msra.mxu3 %v596_v46  ;;  %695 = vmatpush.msra.mxu1 %v645_v37  ;;  %v642_v46 = vld [vmem:[%s1424_s6 + $0x30] sm:$0xff] }
  0xcc   : > { %678 = vmatpush.msra.mxu0 %v659_v45  ;;  %741 = vmatpush.msra.mxu2 %v710_v1 }
  0xcd   : > { %610 = vmatpush.msra.mxu3 %v595_v49  ;;  %696 = vmatpush.msra.mxu1 %v644_v40  ;;  %v641_v49 = vld [vmem:[%s1424_s6 + $0x28] sm:$0xff] }
  0xce   : > { %679 = vmatpush.msra.mxu0 %v658_v48 }
  0xcf   : > { %611 = vmatpush.msra.mxu3 %v594_v52  ;;  %697 = vmatpush.msra.mxu1 %v643_v43  ;;  %v640_v52 = vld [vmem:[%s1424_s6 + $0x20] sm:$0xff] }
  0xd0   : > { %680 = vmatpush.msra.mxu0 %v657_v51 }
  0xd1   : > { %612 = vmatpush.msra.mxu3 %v593_v55  ;;  %698 = vmatpush.msra.mxu1 %v642_v46  ;;  %v639_v55 = vld [vmem:[%s1424_s6 + $0x18] sm:$0xff] }
  0xd2   : > { %681 = vmatpush.msra.mxu0 %v656_v54 }
  0xd3   : > { %613 = vmatpush.msra.mxu3 %v592_v58  ;;  %699 = vmatpush.msra.mxu1 %v641_v49  ;;  %v638_v58 = vld [vmem:[%s1424_s6 + $0x10] sm:$0xff] }
  0xd4   : > { %682 = vmatpush.msra.mxu0 %v655_v57 }
  0xd5   : > { %614 = vmatpush.msra.mxu3 %v591_v61  ;;  %700 = vmatpush.msra.mxu1 %v640_v52  ;;  %v637_v61 = vld [vmem:[%s1424_s6 + $0x8] sm:$0xff] }
  0xd6   : > { %683 = vmatpush.msra.mxu0 %v654_v60 }
  0xd7   : > { %615 = vmatpush.msra.mxu3 %v590_v0  ;;  %701 = vmatpush.msra.mxu1 %v639_v55  ;;  %v636_v0 = vld [vmem:[%s1424_s6] sm:$0xff] }
  0xd8   : > { %684 = vmatpush.msra.mxu0 %v653_v63 }
  0xd9   : > { %616 = vmatpush.msra.mxu3 %v589_v3  ;;  %702 = vmatpush.msra.mxu1 %v638_v58 }
  0xdb   : > { %617 = vmatpush.msra.mxu3 %v588_v7  ;;  %703 = vmatpush.msra.mxu1 %v637_v61 }
  0xdd   : > { %618 = vmatpush.msra.mxu3 %v587_v10  ;;  %704 = vmatpush.msra.mxu1 %v636_v0 }
 0x13c   : > { %v503_v25 = vpop.f32.mrf.mxu0 }
 0x141   : > { %v448_v22 = vpop.f32.mrf.mxu3 }
 0x149   : > { %v471_v23 = vpop.f32.mrf.mxu3 }
 0x14a   : > { %v472_v24 = vadd.f32 %v471_v23, %v448_v22 }
 0x14c   : > { %v506_v26 = vadd.f32 %v503_v25, %v472_v24 }
 0x14e   : > { %509 = vst [vmem:[#allocation4 + $0x1] sm:$0xff] %v506_v26 }
 0x155   : > { %v528_v27 = vld [vmem:[#allocation4 + $0x1] ss:$2 sm:$0xf]  ;;  %v510_v28 = vld [vmem:[#allocation4] ss:$2 sm:$0xf] }
 0x156   : > { %561 = vmatmul.f32.vlgmr.msrb.gmra.mxu1 %v528_v27  ;;  %581 = vmatmul.f32.vlgmr.msrb.gmra.mxu2 %v510_v28  ;;  %v586_v29 = vld [vmem:[#allocation4 + $0x2] ss:$2 sm:$0xf] }
 0x157   : > { %619 = vmatmul.f32.vlgmr.msra.gmra.mxu3 %v586_v29 }
 0x1d3   : > { %v562_v2 = vpop.f32.mrf.mxu1 }
 0x1d9   : > { %v582_v3 = vpop.f32.mrf.mxu2 }
 0x1da   : > { %v583_v4 = vadd.f32 %v582_v3, %v562_v2  ;;  %v620_v7 = vpop.f32.mrf.mxu3 }
 0x1dc   : > { %v623_v8 = vadd.f32 %v620_v7, %v583_v4 }
 0x1de   : > { %v628_v9 = vadd.f32 %v825_v6, %v623_v8 }
 0x1e0   : > { %vm629_vm3 = vcmp.ge.f32.partialorder %v628_v9, 0.0  ;;  %v630_v10 = vmul.f32 0.2, %v628_v9 }
 0x1e2   : > { %v631_v5 = vsel %vm629_vm3, %v628_v9, %v630_v10 }
 0x1e3   : > { %634 = vst [vmem:[#allocation5 + $0x1] sm:$0xf] %v631_v5 }
 0x1ea   : > { %v652_v11 = vld [vmem:[#allocation5 + $0x1] sm:$0xf] }
 0x1eb   : > { %v635_v12 = vld [vmem:[#allocation5] sm:$0xf]  ;;  %685 = vmatmul.f32.vlgmr.msra.gmra.mxu0 %v652_v11 }
 0x1ec   : > { %v709_v13 = vld [vmem:[#allocation5 + $0x2] sm:$0xf]  ;;  %705 = vmatmul.f32.vlgmr.msra.gmra.mxu1 %v635_v12 }
 0x1ed   : > { %742 = vmatmul.f32.vlgmr.msra.gmra.mxu2 %v709_v13 }
 0x268   : > { %v686_v14 = vpop.f32.mrf.mxu0 }
 0x269   : > { %v706_v15 = vpop.f32.mrf.mxu1 }
 0x26a   : > { %v707_v16 = vadd.f32 %v706_v15, %v686_v14 }
 0x270   : > { %v743_v17 = vpop.f32.mrf.mxu2 }
 0x271   : > { %v746_v18 = vadd.f32 %v743_v17, %v707_v16 }
 0x273   : > { %747 = vst [vmem:[%s276_s15] sm:$0xf] %v746_v18 }
 0x274 PF: > { %s17_s24 = sadd.s32 1, %s832_s24  }
 0x275   : > { %p14_p4 = scmp.ge.s32.totalorder %s17_s24, 4  }
 0x277   :  { %16 = sbr.rel (!%p14_p4) target bundleno = 1 (0x1), region = 82 }

</bundles_post_ra>
